<compile_context>
chip_gen: v5e
topology: v5e:2x2
jax: 0.10.0
libtpu: 0.0.40
codegen_flags: <defaults>
</compile_context>

<pallas_src>
import jax
import jax.numpy as jnp
from jax.experimental import pallas as pl
from jax.experimental.pallas import tpu as pltpu


def _round_up(x, m):
    return (x + m - 1) // m * m


def _cdiv(a, b):
    return (a + b - 1) // b


def _embed_kernel(idx_ref, table_ref, out_ref):
    """idx_ref:   VMEM (tile_b, 1) int32 — action ids for this batch tile.
    table_ref: VMEM (num_actions, latent_pad) — resident (constant index_map).
    out_ref:   VMEM (tile_b, latent_pad) — dense lane-full output tile."""
    tile_b = out_ref.shape[0]
    num_actions = table_ref.shape[0]

    ids = idx_ref[...]                                               # (tile_b, 1)
    cols = jax.lax.broadcasted_iota(jnp.int32, (tile_b, num_actions), 1)
    one_hot = (cols == ids).astype(table_ref.dtype)                  # (tile_b, num_actions)

    # One-hot row selection on the MXU. HIGHEST precision => full-f32 contract,
    # so this is a bit-exact copy of the selected rows (0/1 weights are exact).
    out_ref[...] = jnp.dot(
        one_hot,
        table_ref[...],
        preferred_element_type=jnp.float32,
        precision=jax.lax.Precision.HIGHEST,
    ).astype(out_ref.dtype)


def embed_action(x, table, *, max_tile_rows=512):
    """Pallas equivalent of EmbedAction.forward: table[x[:, 0].astype(int)]."""
    bs = x.shape[0]
    num_actions, latent_dim = table.shape

    # idx = input[:, 0].to(long); clamp so the in-kernel select can never go OOB.
    idx = jnp.clip(x[:, 0].astype(jnp.int32), 0, num_actions - 1)

    # Lane-dense output: pad the feature dim to a multiple of 128.
    latent_pad = _round_up(latent_dim, 128)
    if latent_pad != latent_dim:
        table_p = jnp.pad(table, ((0, 0), (0, latent_pad - latent_dim)))
    else:
        table_p = table

    # Batch tiling: sublane-full (multiple of 8) tiles, capped so large batches
    # pipeline over a few big tiles.  If the whole batch would be a single tile,
    # split it in two so v7x megacore can shard the parallel axis.
    tile_b = min(max_tile_rows, _round_up(bs, 8))
    if _round_up(bs, tile_b) // tile_b == 1 and tile_b >= 16:
        tile_b = _round_up(_cdiv(tile_b, 2), 8)
    padded_bs = _round_up(bs, tile_b)

    # Padded rows select table row 0; they are sliced off below.
    idx = jnp.pad(idx, (0, padded_bs - bs)).reshape(padded_bs, 1)

    # Explicit VMEM budget: table is double-buffered by default even though it
    # is DMA'd once, so account for 2x table + output/idx pipeline buffers.
    itemsize = jnp.dtype(table_p.dtype).itemsize
    table_bytes = num_actions * latent_pad * itemsize
    out_tile_bytes = tile_b * latent_pad * itemsize
    vmem_limit = min(
        max(2 * table_bytes + 4 * out_tile_bytes + (4 << 20), 32 << 20),
        96 << 20,
    )

    out = pl.pallas_call(
        _embed_kernel,
        out_shape=jax.ShapeDtypeStruct((padded_bs, latent_pad), table_p.dtype),
        grid=(padded_bs // tile_b,),
        in_specs=[
            # Per-tile action ids (VMEM, vector-readable).
            pl.BlockSpec((tile_b, 1), lambda i: (i, 0)),
            # Whole embedding table; constant index_map => fetched from HBM once.
            pl.BlockSpec((num_actions, latent_pad), lambda i: (0, 0)),
        ],
        out_specs=pl.BlockSpec((tile_b, latent_pad), lambda i: (i, 0)),
        compiler_params=pltpu.CompilerParams(
            dimension_semantics=("parallel",),  # disjoint output tiles -> megacore-safe
            vmem_limit_bytes=vmem_limit,
        ),
    )(idx, table_p)

    return out[:bs, :latent_dim]


if __name__ == "__main__":
    key = jax.random.PRNGKey(0)
    k_table, k_idx, k_table2, k_idx2 = jax.random.split(key, 4)

    # --- primary case: matches the PyTorch module's typical shapes -----------
    num_actions, latent_dim, batch = 16, 128, 8
    action_embedding = jax.random.normal(
        k_table, (num_actions, latent_dim), dtype=jnp.float32
    )
    idx_int = jax.random.randint(k_idx, (batch,), 0, num_actions)
    x = idx_int.astype(jnp.float32)[:, None]          # (batch, 1) float action ids

    out = embed_action(x, action_embedding)
    out = jax.block_until_ready(out)

    ref = action_embedding[idx_int]
    assert out.shape == (batch, latent_dim)
    assert out.dtype == action_embedding.dtype
    assert bool(jnp.allclose(out, ref)), "mismatch vs reference gather (case 1)"

    # --- secondary case: non-128 latent dim, non-multiple-of-8 batch, 2 tiles -
    na2, ld2, b2 = 10, 96, 10
    table2 = jax.random.normal(k_table2, (na2, ld2), dtype=jnp.float32)
    idx2 = jax.random.randint(k_idx2, (b2,), 0, na2)
    x2 = idx2.astype(jnp.float32)[:, None]

    out2 = jax.block_until_ready(embed_action(x2, table2))
    assert out2.shape == (b2, ld2)
    assert bool(jnp.allclose(out2, table2[idx2])), "mismatch vs reference gather (case 2)"

    print("KERNEL_OK")
</pallas_src>

<mosaic_0001>
module attributes {stable_mosaic.version = 11 : i64} {
  func.func @_embed_kernel(%arg0: i32, %arg1: memref<8x1xi32, #tpu.memory_space<vmem>>, %arg2: memref<16x128xf32, #tpu.memory_space<vmem>>, %arg3: memref<8x128xf32, #tpu.memory_space<vmem>>) attributes {dimension_semantics = [#tpu.dimension_semantics<parallel>], iteration_bounds = array<i64: 1>, scalar_prefetch = 0 : i64, scratch_operands = 0 : i64, tpu.core_type = #tpu.core_type<tc>, window_params = [{transform_indices = @transform_0, window_bounds = array<i64: 8, 1>}, {pipeline_mode = #tpu.pipeline_mode<synchronous>, transform_indices = @transform_1, window_bounds = array<i64: 16, 128>}, {transform_indices = @transform_2, window_bounds = array<i64: 8, 128>}]} {
    %c0 = arith.constant 0 : index
    %c0_0 = arith.constant 0 : index
    %0 = vector.load %arg1[%c0, %c0_0] : memref<8x1xi32, #tpu.memory_space<vmem>>, vector<8x1xi32>
    %1 = tpu.iota {dimensions = array<i32: 1>} : vector<8x16xi32>
    %2 = vector.broadcast %0 : vector<8x1xi32> to vector<8x16xi32>
    %3 = arith.cmpi eq, %1, %2 : vector<8x16xi32>
    %4 = arith.extui %3 : vector<8x16xi1> to vector<8x16xi32>
    %5 = arith.sitofp %4 : vector<8x16xi32> to vector<8x16xf32>
    %c0_1 = arith.constant 0 : index
    %c0_2 = arith.constant 0 : index
    %6 = vector.load %arg2[%c0_1, %c0_2] : memref<16x128xf32, #tpu.memory_space<vmem>>, vector<16x128xf32>
    %cst = arith.constant dense<0.000000e+00> : vector<8x128xf32>
    %7 = tpu.matmul %5, %6, %cst {dimension_numbers = #tpu.dot_dimension_numbers<[1], [0], [0], [1], [0, 0, 1, 1], [], []>, precision = #tpu.contract_precision<fp32>} : vector<8x16xf32>, vector<16x128xf32>, vector<8x128xf32> -> vector<8x128xf32>
    %c0_3 = arith.constant 0 : index
    %c0_4 = arith.constant 0 : index
    %8 = vector.load %arg3[%c0_3, %c0_4] : memref<8x128xf32, #tpu.memory_space<vmem>>, vector<8x128xf32>
    tpu.vector_store %arg3[%c0_3, %c0_4], %7 {strides = array<i32>} : memref<8x128xf32, #tpu.memory_space<vmem>>, vector<8x128xf32>,
    return
  }
  func.func @transform_0(%arg0: i32) -> (i32, i32) {
    %c0_i32 = arith.constant 0 : i32
    %c0_i32_0 = arith.constant 0 : i32
    return %arg0, %c0_i32 : i32, i32
  }
  func.func @transform_1(%arg0: i32) -> (i32, i32) {
    %c0_i32 = arith.constant 0 : i32
    %c0_i32_0 = arith.constant 0 : i32
    %c0_i32_1 = arith.constant 0 : i32
    return %c0_i32, %c0_i32_0 : i32, i32
  }
  func.func @transform_2(%arg0: i32) -> (i32, i32) {
    %c0_i32 = arith.constant 0 : i32
    %c0_i32_0 = arith.constant 0 : i32
    return %arg0, %c0_i32 : i32, i32
  }
}

</mosaic_0001>

<bundles_post_ra>
// kernel: tpu_custom_call.1
= control target key start
LH: loop header
LB: loop body
LE: loop exit
PB: predicated region body
PF: predicated region fallthrough
CT: control target
= control target key end

     0   :  { %7 = vsyncpa [#allocation3], 0  ;;  %s313_s0 = inlined_call_operand.vmem [shape: s32[8,1], index: 0, kind: input, shape index: {}]   ;;  %s314_s1 = inlined_call_operand.hbm [shape: f32[16,128], index: 1, kind: input, shape index: {}]   ;;  %s315_s2 = inlined_call_operand.hbm [shape: f32[8,128], index: 2, kind: output, shape index: {}]  }
   0x1   :  { %8 = vsyncpa [#allocation4], 0  ;;  %s15_s11 = sshll.u32 %s314_s1, 4  ;;  %s283_s12 = smov [#allocation2]   ;;  %s16_s11 = int_to_ptr.hbm [resolvable:$true] %s15_s11 }
   0x2   :  { %s17_s13 = sshll.u32 %s283_s12, 4  ;;  %s284_s14 = smov 128   ;;  %s18_s13 = int_to_ptr.vmem [resolvable:$true] %s17_s13 }
   0x3   :  { %s285_s15 = smov 8  }
   0x4   :  { %23 = dma.hbm_to_vmem [thread:$0]  %s16_s11, 256, %s18_s13, [#allocation3], %s284_s14, %s284_s14, %s285_s15  }
   0x5   :  { %279 = dma.done.wait [#allocation3], 256  }
   0x6   :  { %280 = vsyncadd [#allocation3], 4294967040  ;;  %v286_v0 = vmov 0   ;;  %v28_v1 = vld [vmem:[%s313_s0] sm:$0xff]  ;;  %v38_v2 = vld [vmem:[#allocation2 + $0x8] sm:$0xff]  ;;  %v29_v14 = vlaneseq  ;;  %vm39_vm0 = vcmask 130048  }
   0x7   :  { %230 = vset.pattern.permute.xlu0 %v286_v0  ;;  %v57_v3 = vand.u32 4294901760, %v38_v2  ;;  %v37_v8 = vld [vmem:[#allocation2] sm:$0xff]  ;;  %v287_v17 = vmov 0.0   ;;  %s288_s0 = smov [#allocation5]   ;;  %s210_s20 = sshll.u32 %s315_s2, 4  ;;  %s211_s20 = int_to_ptr.hbm [resolvable:$true] %s210_s20 }
   0x8   :  { %32 = vperm.xlu0 %230, %v28_v1   ;;  %v59_v9 = vand.u32 4294901760, %v37_v8  ;;  %v30_v15 = vand.u32 127, %v29_v14  ;;  %s208_s1 = sshll.u32 %s288_s0, 4  ;;  %s209_s1 = int_to_ptr.vmem [resolvable:$true] %s208_s1 }
   0x9   :  { %v85_v4 = vsub.f32 %v38_v2, %v57_v3  ;;  %142 = vmatpush.msra.mxu3 %v57_v3  ;;  %58 = vmatpush.msra.mxu0 %v57_v3 }
   0xa   :  { %v91_v10 = vsub.f32 %v37_v8, %v59_v9 }
   0xb   :  { %v86_v5 = vand.u32 4294901760, %v85_v4  ;;  %117 = vmatpush.msra.mxu2 %v85_v4  ;;  %144 = vmatpush.msra.mxu3 %v59_v9 }
   0xc   :  { %60 = vmatpush.msra.mxu0 %v59_v9  ;;  %v92_v11 = vand.u32 4294901760, %v91_v10 }
   0xd   :  { %v87_v6 = vsub.f32 %v85_v4, %v86_v5  ;;  %120 = vmatpush.msra.mxu2 %v91_v10 }
   0xe   :  { %169 = vmatpush.msrb.mxu0 %v86_v5  ;;  %v93_v12 = vsub.f32 %v91_v10, %v92_v11 }
   0xf   :  { %v88_v7 = vand.u32 4294901760, %v87_v6 }
  0x10   :  { %173 = vmatpush.msrb.mxu0 %v92_v11  ;;  %v94_v13 = vand.u32 4294901760, %v93_v12 }
  0x11   :  { %89 = vmatpush.msra.mxu1 %v88_v7 }
  0x13   :  { %95 = vmatpush.msra.mxu1 %v94_v13 }
  0x15   :  { %194 = vmatpush.msrb.mxu1 %v57_v3 }
  0x17   :  { %196 = vmatpush.msrb.mxu1 %v59_v9 }
  0x7a   :  { %v33_v16 = vpop.permute.xlu0 %32 }
  0x7b   :  { %vm34_vm1 = vcmp.eq.s32.totalorder %v30_v15, %v33_v16 }
  0x7c   :  { %v220_v18 = vsel %vm34_vm1, 1.0, %v287_v17 }
  0x7d   :  { %221 = vmatmul.msk.f32.vlgmr.msra.gmra.mxu1 %vm39_vm0, %v220_v18  ;;  %v41_v19 = vsel %vm39_vm0, %v220_v18, 0 }
  0x7e   :  { %v62_v20 = vsub.f32 %v41_v19, %v41_v19 }
  0x80   :  { %123 = vmatmul.f32.vlgmr.msra.gmra.mxu2 %v62_v20  ;;  %v63_v21 = vand.u32 4294901760, %v62_v20 }
  0x82   :  { %148 = vmatmul.f32.vlgmr.msra.gmra.mxu3 %v63_v21  ;;  %v64_v22 = vsub.f32 %v62_v20, %v63_v21 }
  0x84   :  { %v65_v23 = vand.u32 4294901760, %v64_v22 }
  0x85   :  { %223 = vmatmul.msk.f32.vlgmr.msrb.gmra.mxu1 %vm39_vm0, %v220_v18 }
  0x86   :  { %66 = vmatmul.f32.vlgmr.msra.gmra.mxu0 %v65_v23 }
  0x8e   :  { %222 = vmatmul.msk.f32.vlgmr.msrb.gmra.mxu0 %vm39_vm0, %v220_v18 }
  0xfa   :  { %v98_v24 = vpop.f32.mrf.mxu1 }
 0x102   :  { %v199_v33 = vpop.f32.mrf.mxu1 }
 0x103   :  { %v67_v25 = vpop.f32.mrf.mxu0  ;;  %v124_v27 = vpop.f32.mrf.mxu2 }
 0x104   :  { %v99_v26 = vadd.f32 %v98_v24, %v67_v25 }
 0x105   :  { %v149_v29 = vpop.f32.mrf.mxu3 }
 0x106   :  { %v125_v28 = vadd.f32 %v124_v27, %v99_v26 }
 0x108   :  { %v150_v30 = vadd.f32 %v149_v29, %v125_v28 }
 0x10b   :  { %v176_v31 = vpop.f32.mrf.mxu0 }
 0x10c   :  { %v177_v32 = vadd.f32 %v176_v31, %v150_v30 }
 0x10e   :  { %v200_v34 = vadd.f32 %v199_v33, %v177_v32 }
 0x110   :  { %202 = vst [vmem:[#allocation5] sm:$0xff] %v200_v34 }
 0x111   :  { %213 = dma.vmem_to_hbm [thread:$0]  %s209_s1, 128, %s211_s20, [#allocation4]  }
 0x112   :  { %281 = dma.done.wait [#allocation4], 128  }
 0x113   :  { %282 = vsyncadd [#allocation4], 4294967168 }
 0x114   :  { %218 = vsyncpa [#allocation3], 1 }
 0x115   :  { %219 = vsyncpa [#allocation4], 1 }

</bundles_post_ra>
